<compile_context>
chip_gen: v7x
topology: tpu7x:2x2x1
jax: 0.10.0
libtpu: 0.0.40
codegen_flags: <defaults>
</compile_context>

<pallas_src>
import functools

import jax
import jax.numpy as jnp
from jax.experimental import pallas as pl
from jax.experimental.pallas import tpu as pltpu


def _int_pow(x, n):
    """x**n for a static positive int n via exponentiation by squaring.

    Unrolled at trace time into plain VPU multiplies (no EUP transcendentals).
    """
    result = None
    base = x
    while n > 0:
        if n & 1:
            result = base if result is None else result * base
        n >>= 1
        if n:
            base = base * base
    return result


def _gem_kernel(p_ref, x_ref, o_ref, *, mode, eps, inv_s, int_p):
    """Reduce one (TB, S) row-tile to (TB, 1).

    p_ref : SMEM (1,) f32  -- learned exponent p (only read on the general path)
    x_ref : VMEM (TB, S)   -- TB independent (batch*channel) rows
    o_ref : VMEM (TB, 1)   -- pooled value per row
    """
    x = x_ref[...].astype(jnp.float32)
    if mode == "mean":                       # torch branch: p == 1 (no clamp)
        o_ref[...] = (jnp.sum(x, axis=1, keepdims=True) * inv_s).astype(o_ref.dtype)
    elif mode == "max":                      # torch branch: p == inf
        o_ref[...] = jnp.max(x, axis=1, keepdims=True).astype(o_ref.dtype)
    else:                                    # general p (default p = 3)
        xc = jnp.maximum(x, eps)             # clamp(min=eps) -> strictly positive
        if int_p is not None:
            # Fast path: small integer exponent -> pure VPU multiplies.
            xp = _int_pow(xc, int_p)
            m = jnp.sum(xp, axis=1, keepdims=True) * inv_s     # mean, (TB, 1)
            o_ref[...] = jnp.exp(jnp.log(m) * (1.0 / int_p)).astype(o_ref.dtype)
        else:
            p = p_ref[0]
            xp = jnp.exp(p * jnp.log(xc))    # x^p on the EUP (safe: xc >= eps)
            m = jnp.sum(xp, axis=1, keepdims=True) * inv_s     # mean, (TB, 1)
            o_ref[...] = jnp.exp(jnp.log(m) * (1.0 / p)).astype(o_ref.dtype)


def _choose_row_tile(n_rows, s, itemsize):
    # Mem-bound kernel: pick the biggest row tile that stays well inside VMEM,
    # accounting for lane padding (last dim rounds up to 128 in VMEM).
    s_pad = ((s + 127) // 128) * 128
    target_bytes = 4 * 1024 * 1024           # ~4 MiB/tile, x2 double-buffered
    tb = target_bytes // max(1, s_pad * itemsize)
    tb -= tb % 8                              # sublane multiple of 8
    rows_padded = ((n_rows + 7) // 8) * 8
    return int(max(8, min(tb, rows_padded)))


def gem(x, p=3.0, eps=1e-6):
    """Pallas TPU implementation of GeM.forward for 3D or 4D inputs.

    Returns an array of shape (B, C).
    """
    p = float(p)  # the branch on p (like torch eager) is resolved at trace time
    if x.ndim == 3:
        B, C, L = x.shape
        S = L
    elif x.ndim == 4:
        B, C, H, W = x.shape
        S = H * W
    else:
        raise ValueError(f"GeM expects a 3D or 4D input, got ndim={x.ndim}")

    N = B * C
    x2 = x.reshape(N, S)

    if p == 1.0:
        mode = "mean"
    elif p == float("inf"):
        mode = "max"
    else:
        mode = "gem"

    # Integer exponent fast path (covers the module default p = 3).
    int_p = None
    if mode == "gem" and p == int(p) and 2 <= int(p) <= 32:
        int_p = int(p)

    itemsize = jnp.dtype(x.dtype).itemsize
    TB = _choose_row_tile(N, S, itemsize)
    # TODO(synk): for extreme spatial sizes (8 * roundup(S,128) * itemsize past
    # the VMEM budget) add a trailing "arbitrary" reduction grid axis over S
    # with a (TB, 1) scratch accumulator; full-S blocks are kept for simplicity.

    kernel = functools.partial(
        _gem_kernel, mode=mode, eps=float(eps), inv_s=1.0 / S, int_p=int_p)
    p_arr = jnp.asarray([p if p != float("inf") else 0.0], dtype=jnp.float32)

    out = pl.pallas_call(
        kernel,
        out_shape=jax.ShapeDtypeStruct((N, 1), x.dtype),
        grid=(pl.cdiv(N, TB),),
        in_specs=[
            pl.BlockSpec(memory_space=pltpu.MemorySpace.SMEM),   # scalar p
            pl.BlockSpec((TB, S), lambda i: (i, 0)),             # row tile of x
        ],
        out_specs=pl.BlockSpec((TB, 1), lambda i: (i, 0)),
        compiler_params=pltpu.CompilerParams(
            dimension_semantics=("parallel",),
            vmem_limit_bytes=48 * 1024 * 1024,
        ),
    )(p_arr, x2)

    return out.reshape(B, C)


def _reference(x, p, eps):
    xf = x.astype(jnp.float32)
    axes = (-1,) if x.ndim == 3 else (-2, -1)
    if p == 1.0:
        return jnp.mean(xf, axis=axes).astype(x.dtype)
    if p == float("inf"):
        return jnp.max(xf, axis=axes).astype(x.dtype)
    m = jnp.mean(jnp.maximum(xf, eps) ** p, axis=axes)
    return (m ** (1.0 / p)).astype(x.dtype)


if __name__ == "__main__":
    key = jax.random.PRNGKey(0)
    B, C, H, W = 2, 4, 16, 16
    x4 = jax.random.normal(key, (B, C, H, W), dtype=jnp.float32)
    x3 = jax.random.normal(jax.random.fold_in(key, 1), (B, C, 16), dtype=jnp.float32)

    # Module defaults: p = Parameter(ones(1) * 3) -> 3.0, eps = 1e-6
    p, eps = 3.0, 1e-6

    out4 = gem(x4, p, eps)
    jax.block_until_ready(out4)
    ref4 = _reference(x4, p, eps)
    assert out4.shape == (B, C) and out4.dtype == x4.dtype
    assert jnp.max(jnp.abs(out4 - ref4)) < 1e-4

    out3 = gem(x3, p, eps)
    jax.block_until_ready(out3)
    assert jnp.max(jnp.abs(out3 - _reference(x3, p, eps))) < 1e-4

    # Non-integer p exercises the runtime-exponent EUP path.
    out_frac = gem(x4, 2.5, eps)
    jax.block_until_ready(out_frac)
    assert jnp.max(jnp.abs(out_frac - _reference(x4, 2.5, eps))) < 1e-4

    # p == 1 and p == inf branches of the module
    out_mean = gem(x4, 1.0, eps)
    jax.block_until_ready(out_mean)
    assert jnp.max(jnp.abs(out_mean - _reference(x4, 1.0, eps))) < 1e-5

    out_max = gem(x4, float("inf"), eps)
    jax.block_until_ready(out_max)
    assert jnp.max(jnp.abs(out_max - _reference(x4, float("inf"), eps))) < 1e-5

    print("KERNEL_OK")
</pallas_src>

<mosaic_0001>
module attributes {stable_mosaic.version = 11 : i64} {
  func.func @_gem_kernel(%arg0: i32, %arg1: memref<1xf32, #tpu.memory_space<smem>>, %arg2: memref<8x256xf32, #tpu.memory_space<vmem>>, %arg3: memref<8x1xf32, #tpu.memory_space<vmem>>) attributes {dimension_semantics = [#tpu.dimension_semantics<parallel>], iteration_bounds = array<i64: 1>, scalar_prefetch = 0 : i64, scratch_operands = 0 : i64, tpu.core_type = #tpu.core_type<tc>, window_params = [{transform_indices = @transform_0, window_bounds = array<i64: 1>}, {transform_indices = @transform_1, window_bounds = array<i64: 8, 256>}, {transform_indices = @transform_2, window_bounds = array<i64: 8, 1>}]} {
    %c0 = arith.constant 0 : index
    %c0_0 = arith.constant 0 : index
    %0 = vector.load %arg2[%c0, %c0_0] : memref<8x256xf32, #tpu.memory_space<vmem>>, vector<8x256xf32>
    %cst = arith.constant 9.99999997E-7 : f32
    %1 = vector.broadcast %cst : f32 to vector<8x256xf32>
    %2 = arith.maximumf %0, %1 : vector<8x256xf32>
    %3 = arith.mulf %2, %2 : vector<8x256xf32>
    %4 = arith.mulf %2, %3 : vector<8x256xf32>
    %cst_1 = arith.constant dense<0.000000e+00> : vector<8xf32>
    %5 = vector.multi_reduction <add>, %4, %cst_1 [1] : vector<8x256xf32> to vector<8xf32>
    %6 = vector.shape_cast %5 : vector<8xf32> to vector<8x1xf32>
    %cst_2 = arith.constant 3.906250e-03 : f32
    %7 = vector.broadcast %cst_2 : f32 to vector<8x1xf32>
    %8 = arith.mulf %6, %7 : vector<8x1xf32>
    %9 = math.log %8 : vector<8x1xf32>
    %cst_3 = arith.constant 0.333333343 : f32
    %10 = vector.broadcast %cst_3 : f32 to vector<8x1xf32>
    %11 = arith.mulf %9, %10 : vector<8x1xf32>
    %12 = math.exp %11 : vector<8x1xf32>
    %c0_4 = arith.constant 0 : index
    %c0_5 = arith.constant 0 : index
    %13 = vector.load %arg3[%c0_4, %c0_5] : memref<8x1xf32, #tpu.memory_space<vmem>>, vector<8x1xf32>
    tpu.vector_store %arg3[%c0_4, %c0_5], %12 {strides = array<i32>} : memref<8x1xf32, #tpu.memory_space<vmem>>, vector<8x1xf32>,
    return
  }
  func.func @transform_0(%arg0: i32) -> i32 {
    %c0_i32 = arith.constant 0 : i32
    %c0_i32_0 = arith.constant 0 : i32
    return %c0_i32 : i32
  }
  func.func @transform_1(%arg0: i32) -> (i32, i32) {
    %c0_i32 = arith.constant 0 : i32
    %c0_i32_0 = arith.constant 0 : i32
    return %arg0, %c0_i32 : i32, i32
  }
  func.func @transform_2(%arg0: i32) -> (i32, i32) {
    %c0_i32 = arith.constant 0 : i32
    %c0_i32_0 = arith.constant 0 : i32
    return %arg0, %c0_i32 : i32, i32
  }
}

</mosaic_0001>

<bundles_post_ra>
// kernel: tpu_custom_call.1
= control target key start
LH: loop header
LB: loop body
LE: loop exit
PB: predicated region body
PF: predicated region fallthrough
CT: control target
= control target key end

     0   :  { %8 = vsyncpa [#allocation4], 0  ;;  %s77_s9 = smov [#allocation3]   ;;  %s108_s0 = inlined_call_operand.<no memory space> [shape: f32[1], index: 0, kind: input, shape index: {}]   ;;  %s109_s1 = inlined_call_operand.hbm [shape: f32[8,256], index: 1, kind: input, shape index: {}]   ;;  %s110_s2 = inlined_call_operand.vmem [shape: f32[8,1], index: 2, kind: output, shape index: {}]  }
   0x1   :  { %s17_s10 = sshll.u32 %s77_s9, 4  ;;  %s53_s13 = scalar_lea.hbm %s109_s1, 256  ;;  %s18_s10 = int_to_ptr.vmem [resolvable:$true] %s17_s10 }
   0x2   :  { %p54_p0 = scmp.ne.s32.totalorder %s109_s1, %s53_s13  ;;  %p57_p1 = scmp.lt.u32.totalorder %s53_s13, %s109_s1 }
   0x4   :  { %p59_p2 = pnand %p57_p1, %p54_p0 }
   0x6   :  { %62 = shalt.err (!%p59_p2)
}
   0x7   :  { %s63_s17 = scalar_lea.vmem %s18_s10, 256  ;;  %p68_p4 = scmp.lt.s32.totalorder %s18_s10, %s18_s10 }
   0x8   :  { %p64_p3 = scmp.ne.s32.totalorder %s18_s10, %s63_s17  ;;  %p69_p5 = scmp.lt.s32.totalorder %s63_s17, %s63_s17 }
   0xa   :  { %p70_p6 = por %p69_p5, %p68_p4 }
   0xc   :  { %p71_p7 = pnand %p70_p6, %p64_p3 }
   0xe   :  { %74 = shalt.err (!%p71_p7)
}
   0xf   :  { %20 = dma.hbm_to_vmem [thread:$0]  %s109_s1, 256, %s18_s10, [#allocation4]  }
  0x10   :  { %75 = dma.done.wait [#allocation4], 256  }
  0x11   :  { %76 = vsyncadd [#allocation4], 4294967040  ;;  %v24_v0 = vld [vmem:[#allocation3] sm:$0xff]  ;;  %v25_v1 = vld [vmem:[#allocation3 + $0x8] sm:$0xff]  ;;  %vm41_vm0 = vcmask 7168  }
  0x12   :  { %v26_v2 = vmax.f32 %v24_v0, 1e-06  ;;  %v27_v3 = vmax.f32 %v25_v1, 1e-06 }
  0x14   :  { %v28_v4 = vmul.f32 %v26_v2, %v26_v2  ;;  %v29_v5 = vmul.f32 %v27_v3, %v27_v3 }
  0x16   :  { %v30_v6 = vmul.f32 %v28_v4, %v26_v2  ;;  %v31_v7 = vmul.f32 %v29_v5, %v27_v3 }
  0x18   :  { %v32_v8 = vadd.f32 %v31_v7, %v30_v6 }
  0x1a   :  { %33 = vadd.xlane.f32.xlu0 %v32_v8 }
  0xa7   :  { %v34_v9 = vpop.xlane.xlu0 %33 }
  0xa8   :  { %v35_v10 = vmul.f32 0.00390625, %v34_v9 }
  0xaa   :  { %49 = vlog2.f32 %v35_v10 }
  0xb4   :  { %v50_v11 = vpop.eup %49 }
  0xb5   :  { %v37_v12 = vmul.f32 0.6931472, %v50_v11 }
  0xb7   :  { %v38_v13 = vmul.f32 0.33333334, %v37_v12 }
  0xb9   :  { %v39_v14 = vmul.f32 1.442695, %v38_v13 }
  0xbb   :  { %51 = vpow2.f32 %v39_v14 }
  0xc5   :  { %v52_v15 = vpop.eup %51 }
  0xc6   :  { %42 = vst.msk [vmem:[%s110_s2] sm:$0xff] %vm41_vm0, %v52_v15 }
  0xc7   :  { %47 = vsyncpa [#allocation4], 1 }

</bundles_post_ra>
